<compile_context>
chip_gen: v7x
topology: tpu7x:2x2x1
jax: 0.10.0
libtpu: 0.0.40
codegen_flags: <defaults>
</compile_context>

<pallas_src>
import functools

import jax
import jax.numpy as jnp
import numpy as np
from jax.experimental import pallas as pl
from jax.experimental.pallas import tpu as pltpu


def magic_model_kernel(*refs, dins):
    """Fused forward over all MAGICConv layers.

    refs = (sel_src, sel_dst, x, edge_attr, Wa_cat, ba_cat,
            [W_agg, W_x, b] * num_layers, out)
    """
    sel_src_ref, sel_dst_ref, x_ref, ea_ref, wa_cat_ref, ba_cat_ref = refs[:6]
    out_ref = refs[-1]
    layer_refs = refs[6:-1]

    # One-hot selection matrices (bf16, exact 0/1), built once in the wrapper.
    sel_src = sel_src_ref[...]                         # [E, N] : x_j = sel_src @ h
    sel_dst = sel_dst_ref[...]                         # [N, E] : agg = sel_dst @ msg

    # Hoisted anet: edge_attr is layer-invariant, so compute EVERY layer's aligned
    # edge features with one wide bf16 MXU matmul and slice per layer below.
    ea = ea_ref[...].astype(jnp.bfloat16)              # [E, De]
    e_all = (jnp.dot(ea, wa_cat_ref[...], preferred_element_type=jnp.float32)
             + ba_cat_ref[...])                        # [E, sum(Din_l)] f32

    h = x_ref[...]                                     # [N, Din0] f32 (stays f32 across layers)
    off = 0
    for layer, din in enumerate(dins):
        wagg_ref, wx_ref, b_ref = layer_refs[3 * layer:3 * layer + 3]

        e = e_all[:, off:off + din]                    # [E, din] (static slice)
        off += din

        hb = h.astype(jnp.bfloat16)                    # single bf16 round per layer

        # message = relu(h[src] + e); gather via bf16 one-hot matmul (MXU, f32 acc).
        x_j = jnp.dot(sel_src, hb, preferred_element_type=jnp.float32)           # [E, din]
        msg = jnp.maximum(x_j + e, 0.0)

        # aggregate: scatter-add onto destination nodes via bf16 one-hot matmul.
        agg = jnp.dot(sel_dst, msg.astype(jnp.bfloat16),
                      preferred_element_type=jnp.float32)                        # [N, din]

        # GIN mlp: concat([agg,(1+eps)*h]) @ W + b == agg@W_agg + h@((1+eps)W_x) + b
        z = (jnp.dot(agg.astype(jnp.bfloat16), wagg_ref[...],
                     preferred_element_type=jnp.float32)
             + jnp.dot(hb, wx_ref[...], preferred_element_type=jnp.float32)
             + b_ref[...])                                                       # [N, dout]
        h = jnp.where(z > 0.0, z, 0.2 * z)             # LeakyReLU(negative_slope=0.2)

    out_ref[...] = jnp.maximum(h, 0.0)                 # final model-level .relu()


def _padded_vmem_bytes(shapes_dtypes):
    """Rough (8/16-sublane x 128-lane padded) VMEM footprint of 2-D arrays."""
    total = 0
    for shape, dtype in shapes_dtypes:
        itemsize = jnp.dtype(dtype).itemsize
        sub = {4: 8, 2: 16, 1: 32}.get(itemsize, 8)
        r = int(np.prod(shape[:-1])) if len(shape) > 1 else 1
        c = shape[-1]
        total += (-(-r // sub) * sub) * (-(-c // 128) * 128) * itemsize
    return total


def magic_model_forward(x, edge_index, edge_attr, prepped):
    """Full MAGICModel forward as a single fused pallas_call."""
    N = x.shape[0]
    E = edge_attr.shape[0]
    src = edge_index[0].astype(jnp.int32)              # [E]
    dst = edge_index[1].astype(jnp.int32)              # [E]

    # One-hot gather/scatter matrices built once outside the kernel (edge_index is
    # fixed per call). bf16 is exact for 0/1 so selection stays exact.
    sel_src = (jax.lax.broadcasted_iota(jnp.int32, (E, N), 1)
               == src[:, None]).astype(jnp.bfloat16)   # [E, N]
    sel_dst = (jax.lax.broadcasted_iota(jnp.int32, (N, E), 0)
               == dst[None, :]).astype(jnp.bfloat16)   # [N, E]

    flat_params = []
    for lp in prepped["layers"]:
        flat_params += [lp["W_agg"], lp["W_x"], lp["b"]]

    d_out = prepped["dout"]

    # Guard the grid-less full-residency design against the VMEM ceiling
    # (conservative budget below the default scoped limit on all generations).
    inputs = [sel_src, sel_dst, x, edge_attr, prepped["Wa_cat"], prepped["ba_cat"]] + flat_params
    est = _padded_vmem_bytes([(a.shape, a.dtype) for a in inputs]
                             + [((N, d_out), jnp.float32)])
    assert est * 3 < 24 * 1024 * 1024, (
        f"graph too large for the fused full-residency kernel (~{est} B inputs); "
        "switch to the edge-tiled / scalar-prefetch gather path.")

    vmem = pl.BlockSpec(memory_space=pltpu.MemorySpace.VMEM)
    n_inputs = len(inputs)

    kern = functools.partial(magic_model_kernel, dins=prepped["dins"])
    return pl.pallas_call(
        kern,
        out_shape=jax.ShapeDtypeStruct((N, d_out), jnp.float32),
        in_specs=[vmem] * n_inputs,
        out_specs=vmem,
    )(*inputs)


# ---------------- one-time parameter prep (done once, outside the kernel) ----------------
def prepare_params(params):
    """Concat anet weights, split W into W_agg/W_x, fold (1+eps) into W_x, cast to bf16."""
    wa_list, ba_list, layers, dins = [], [], [], []
    for p in params:
        din = p["Wa"].shape[1]
        dins.append(din)
        wa_list.append(p["Wa"])
        ba_list.append(p["ba"])
        W = p["W"]
        layers.append(dict(
            W_agg=W[:din, :].astype(jnp.bfloat16),
            W_x=(W[din:, :] * (1.0 + p["eps"][0, 0])).astype(jnp.bfloat16),
            b=p["b"].astype(jnp.float32),
        ))
    return dict(
        Wa_cat=jnp.concatenate(wa_list, axis=1).astype(jnp.bfloat16),  # [De, sum(Din_l)]
        ba_cat=jnp.concatenate(ba_list, axis=1).astype(jnp.float32),   # [1,  sum(Din_l)]
        layers=layers,
        dins=tuple(dins),
        dout=int(params[-1]["W"].shape[1]),
    )


# ---------------- pure-JAX f32 reference (for correctness check) ----------------
def reference_forward(x, edge_index, edge_attr, params):
    hp = jax.lax.Precision.HIGHEST
    src = edge_index[0]
    dst = edge_index[1]
    h = x
    for p in params:
        e = jnp.dot(edge_attr, p["Wa"], precision=hp) + p["ba"]
        msg = jnp.maximum(h[src] + e, 0.0)
        agg = jax.ops.segment_sum(msg, dst, num_segments=h.shape[0])
        cat = jnp.concatenate([agg, (1.0 + p["eps"][0, 0]) * h], axis=-1)
        z = jnp.dot(cat, p["W"], precision=hp) + p["b"]
        h = jnp.where(z > 0, z, 0.2 * z)
    return jnp.maximum(h, 0.0)


# ---------------- deterministic parameter construction ----------------
def make_params(key, dim_input, dim_edge, conv_sizes, eps=1e-4):
    params = []
    all_dims = (dim_input,) + tuple(conv_sizes)
    for dim_in, dim_out in zip(all_dims[:-1], all_dims[1:]):
        key, k1, k2, k3, k4 = jax.random.split(key, 5)
        # anet: Linear(dim_edge, dim_in) -> stored as [De, Din] for x @ W
        lim_a = 1.0 / np.sqrt(dim_edge)
        Wa = jax.random.uniform(k1, (dim_edge, dim_in), jnp.float32, -lim_a, lim_a)
        ba = jax.random.uniform(k2, (1, dim_in), jnp.float32, -lim_a, lim_a)
        # GIN mlp: Linear(2*dim_in, dim_out) with xavier_uniform weight
        fan_in, fan_out = 2 * dim_in, dim_out
        lim_w = np.sqrt(6.0 / (fan_in + fan_out))
        W = jax.random.uniform(k3, (2 * dim_in, dim_out), jnp.float32, -lim_w, lim_w)
        lim_b = 1.0 / np.sqrt(fan_in)
        b = jax.random.uniform(k4, (1, dim_out), jnp.float32, -lim_b, lim_b)
        params.append(dict(Wa=Wa, ba=ba, W=W, b=b,
                           eps=jnp.full((1, 1), eps, jnp.float32)))
    return params


if __name__ == "__main__":
    key = jax.random.PRNGKey(0)

    # Small graph: N nodes, E directed edges, 3 MAGICConv layers.
    N, E = 8, 16
    dim_input, dim_edge = 8, 6
    conv_sizes = (16, 16, 8)

    key, kx, ke, ks, kd = jax.random.split(key, 5)
    x = jax.random.normal(kx, (N, dim_input), jnp.float32)
    edge_attr = jax.random.normal(ke, (E, dim_edge), jnp.float32)
    src_idx = jax.random.randint(ks, (E,), 0, N, jnp.int32)
    dst_idx = jax.random.randint(kd, (E,), 0, N, jnp.int32)
    edge_index = jnp.stack([src_idx, dst_idx], axis=0)       # [2, E]

    params = make_params(key, dim_input, dim_edge, conv_sizes)
    prepped = prepare_params(params)   # one-time: concat Wa, split W, fold (1+eps), bf16 cast

    out = magic_model_forward(x, edge_index, edge_attr, prepped)
    out = jax.block_until_ready(out)

    # Tolerance reflects bf16 MXU operands (f32 accumulate) over 3 layers vs f32 reference.
    ref = reference_forward(x, edge_index, edge_attr, params)
    np.testing.assert_allclose(np.asarray(out), np.asarray(ref), rtol=5e-2, atol=1e-1)

    print("KERNEL_OK")
</pallas_src>

<mosaic_0001>
module attributes {stable_mosaic.version = 11 : i64} {
  func.func @magic_model_kernel(%arg0: memref<16x8xbf16, #tpu.memory_space<vmem>>, %arg1: memref<8x16xbf16, #tpu.memory_space<vmem>>, %arg2: memref<8x8xf32, #tpu.memory_space<vmem>>, %arg3: memref<16x6xf32, #tpu.memory_space<vmem>>, %arg4: memref<6x40xbf16, #tpu.memory_space<vmem>>, %arg5: memref<1x40xf32, #tpu.memory_space<vmem>>, %arg6: memref<8x16xbf16, #tpu.memory_space<vmem>>, %arg7: memref<8x16xbf16, #tpu.memory_space<vmem>>, %arg8: memref<1x16xf32, #tpu.memory_space<vmem>>, %arg9: memref<16x16xbf16, #tpu.memory_space<vmem>>, %arg10: memref<16x16xbf16, #tpu.memory_space<vmem>>, %arg11: memref<1x16xf32, #tpu.memory_space<vmem>>, %arg12: memref<16x8xbf16, #tpu.memory_space<vmem>>, %arg13: memref<16x8xbf16, #tpu.memory_space<vmem>>, %arg14: memref<1x8xf32, #tpu.memory_space<vmem>>, %arg15: memref<8x8xf32, #tpu.memory_space<vmem>>) attributes {dimension_semantics = [], scalar_prefetch = 0 : i64, scratch_operands = 0 : i64, tpu.core_type = #tpu.core_type<tc>} {
    %c0 = arith.constant 0 : index
    %c0_0 = arith.constant 0 : index
    %0 = vector.load %arg0[%c0, %c0_0] : memref<16x8xbf16, #tpu.memory_space<vmem>>, vector<16x8xbf16>
    %c0_1 = arith.constant 0 : index
    %c0_2 = arith.constant 0 : index
    %1 = vector.load %arg1[%c0_1, %c0_2] : memref<8x16xbf16, #tpu.memory_space<vmem>>, vector<8x16xbf16>
    %c0_3 = arith.constant 0 : index
    %c0_4 = arith.constant 0 : index
    %2 = vector.load %arg3[%c0_3, %c0_4] : memref<16x6xf32, #tpu.memory_space<vmem>>, vector<16x6xf32>
    %3 = arith.truncf %2 : vector<16x6xf32> to vector<16x6xbf16>
    %c0_5 = arith.constant 0 : index
    %c0_6 = arith.constant 0 : index
    %4 = vector.load %arg4[%c0_5, %c0_6] : memref<6x40xbf16, #tpu.memory_space<vmem>>, vector<6x40xbf16>
    %cst = arith.constant dense<0.000000e+00> : vector<16x40xf32>
    %5 = tpu.matmul %3, %4, %cst {dimension_numbers = #tpu.dot_dimension_numbers<[1], [0], [0], [1], [0, 0, 1, 1], [], []>} : vector<16x6xbf16>, vector<6x40xbf16>, vector<16x40xf32> -> vector<16x40xf32>
    %c0_7 = arith.constant 0 : index
    %c0_8 = arith.constant 0 : index
    %6 = vector.load %arg5[%c0_7, %c0_8] : memref<1x40xf32, #tpu.memory_space<vmem>>, vector<1x40xf32>
    %7 = vector.broadcast %6 : vector<1x40xf32> to vector<16x40xf32>
    %8 = arith.addf %5, %7 : vector<16x40xf32>
    %c0_9 = arith.constant 0 : index
    %c0_10 = arith.constant 0 : index
    %9 = vector.load %arg2[%c0_9, %c0_10] : memref<8x8xf32, #tpu.memory_space<vmem>>, vector<8x8xf32>
    %10 = vector.extract_strided_slice %8 {offsets = [0, 0], sizes = [16, 8], strides = [1, 1]} : vector<16x40xf32> to vector<16x8xf32>
    %11 = arith.truncf %9 : vector<8x8xf32> to vector<8x8xbf16>
    %cst_11 = arith.constant dense<0.000000e+00> : vector<16x8xf32>
    %12 = tpu.matmul %0, %11, %cst_11 {dimension_numbers = #tpu.dot_dimension_numbers<[1], [0], [0], [1], [0, 0, 1, 1], [], []>} : vector<16x8xbf16>, vector<8x8xbf16>, vector<16x8xf32> -> vector<16x8xf32>
    %13 = arith.addf %12, %10 : vector<16x8xf32>
    %cst_12 = arith.constant 0.000000e+00 : f32
    %14 = vector.broadcast %cst_12 : f32 to vector<16x8xf32>
    %15 = arith.maximumf %13, %14 : vector<16x8xf32>
    %16 = arith.truncf %15 : vector<16x8xf32> to vector<16x8xbf16>
    %cst_13 = arith.constant dense<0.000000e+00> : vector<8x8xf32>
    %17 = tpu.matmul %1, %16, %cst_13 {dimension_numbers = #tpu.dot_dimension_numbers<[1], [0], [0], [1], [0, 0, 1, 1], [], []>} : vector<8x16xbf16>, vector<16x8xbf16>, vector<8x8xf32> -> vector<8x8xf32>
    %18 = arith.truncf %17 : vector<8x8xf32> to vector<8x8xbf16>
    %c0_14 = arith.constant 0 : index
    %c0_15 = arith.constant 0 : index
    %19 = vector.load %arg6[%c0_14, %c0_15] : memref<8x16xbf16, #tpu.memory_space<vmem>>, vector<8x16xbf16>
    %cst_16 = arith.constant dense<0.000000e+00> : vector<8x16xf32>
    %20 = tpu.matmul %18, %19, %cst_16 {dimension_numbers = #tpu.dot_dimension_numbers<[1], [0], [0], [1], [0, 0, 1, 1], [], []>} : vector<8x8xbf16>, vector<8x16xbf16>, vector<8x16xf32> -> vector<8x16xf32>
    %c0_17 = arith.constant 0 : index
    %c0_18 = arith.constant 0 : index
    %21 = vector.load %arg7[%c0_17, %c0_18] : memref<8x16xbf16, #tpu.memory_space<vmem>>, vector<8x16xbf16>
    %cst_19 = arith.constant dense<0.000000e+00> : vector<8x16xf32>
    %22 = tpu.matmul %11, %21, %cst_19 {dimension_numbers = #tpu.dot_dimension_numbers<[1], [0], [0], [1], [0, 0, 1, 1], [], []>} : vector<8x8xbf16>, vector<8x16xbf16>, vector<8x16xf32> -> vector<8x16xf32>
    %23 = arith.addf %20, %22 : vector<8x16xf32>
    %c0_20 = arith.constant 0 : index
    %c0_21 = arith.constant 0 : index
    %24 = vector.load %arg8[%c0_20, %c0_21] : memref<1x16xf32, #tpu.memory_space<vmem>>, vector<1x16xf32>
    %25 = vector.broadcast %24 : vector<1x16xf32> to vector<8x16xf32>
    %26 = arith.addf %23, %25 : vector<8x16xf32>
    %cst_22 = arith.constant 0.000000e+00 : f32
    %27 = vector.broadcast %cst_22 : f32 to vector<8x16xf32>
    %28 = arith.cmpf ogt, %26, %27 : vector<8x16xf32>
    %cst_23 = arith.constant 2.000000e-01 : f32
    %29 = vector.broadcast %cst_23 : f32 to vector<8x16xf32>
    %30 = arith.mulf %29, %26 : vector<8x16xf32>
    %31 = arith.select %28, %26, %30 : vector<8x16xi1>, vector<8x16xf32>
    %32 = vector.extract_strided_slice %8 {offsets = [0, 8], sizes = [16, 16], strides = [1, 1]} : vector<16x40xf32> to vector<16x16xf32>
    %33 = arith.truncf %31 : vector<8x16xf32> to vector<8x16xbf16>
    %cst_24 = arith.constant dense<0.000000e+00> : vector<16x16xf32>
    %34 = tpu.matmul %0, %33, %cst_24 {dimension_numbers = #tpu.dot_dimension_numbers<[1], [0], [0], [1], [0, 0, 1, 1], [], []>} : vector<16x8xbf16>, vector<8x16xbf16>, vector<16x16xf32> -> vector<16x16xf32>
    %35 = arith.addf %34, %32 : vector<16x16xf32>
    %cst_25 = arith.constant 0.000000e+00 : f32
    %36 = vector.broadcast %cst_25 : f32 to vector<16x16xf32>
    %37 = arith.maximumf %35, %36 : vector<16x16xf32>
    %38 = arith.truncf %37 : vector<16x16xf32> to vector<16x16xbf16>
    %cst_26 = arith.constant dense<0.000000e+00> : vector<8x16xf32>
    %39 = tpu.matmul %1, %38, %cst_26 {dimension_numbers = #tpu.dot_dimension_numbers<[1], [0], [0], [1], [0, 0, 1, 1], [], []>} : vector<8x16xbf16>, vector<16x16xbf16>, vector<8x16xf32> -> vector<8x16xf32>
    %40 = arith.truncf %39 : vector<8x16xf32> to vector<8x16xbf16>
    %c0_27 = arith.constant 0 : index
    %c0_28 = arith.constant 0 : index
    %41 = vector.load %arg9[%c0_27, %c0_28] : memref<16x16xbf16, #tpu.memory_space<vmem>>, vector<16x16xbf16>
    %cst_29 = arith.constant dense<0.000000e+00> : vector<8x16xf32>
    %42 = tpu.matmul %40, %41, %cst_29 {dimension_numbers = #tpu.dot_dimension_numbers<[1], [0], [0], [1], [0, 0, 1, 1], [], []>} : vector<8x16xbf16>, vector<16x16xbf16>, vector<8x16xf32> -> vector<8x16xf32>
    %c0_30 = arith.constant 0 : index
    %c0_31 = arith.constant 0 : index
    %43 = vector.load %arg10[%c0_30, %c0_31] : memref<16x16xbf16, #tpu.memory_space<vmem>>, vector<16x16xbf16>
    %cst_32 = arith.constant dense<0.000000e+00> : vector<8x16xf32>
    %44 = tpu.matmul %33, %43, %cst_32 {dimension_numbers = #tpu.dot_dimension_numbers<[1], [0], [0], [1], [0, 0, 1, 1], [], []>} : vector<8x16xbf16>, vector<16x16xbf16>, vector<8x16xf32> -> vector<8x16xf32>
    %45 = arith.addf %42, %44 : vector<8x16xf32>
    %c0_33 = arith.constant 0 : index
    %c0_34 = arith.constant 0 : index
    %46 = vector.load %arg11[%c0_33, %c0_34] : memref<1x16xf32, #tpu.memory_space<vmem>>, vector<1x16xf32>
    %47 = vector.broadcast %46 : vector<1x16xf32> to vector<8x16xf32>
    %48 = arith.addf %45, %47 : vector<8x16xf32>
    %cst_35 = arith.constant 0.000000e+00 : f32
    %49 = vector.broadcast %cst_35 : f32 to vector<8x16xf32>
    %50 = arith.cmpf ogt, %48, %49 : vector<8x16xf32>
    %cst_36 = arith.constant 2.000000e-01 : f32
    %51 = vector.broadcast %cst_36 : f32 to vector<8x16xf32>
    %52 = arith.mulf %51, %48 : vector<8x16xf32>
    %53 = arith.select %50, %48, %52 : vector<8x16xi1>, vector<8x16xf32>
    %54 = vector.extract_strided_slice %8 {offsets = [0, 24], sizes = [16, 16], strides = [1, 1]} : vector<16x40xf32> to vector<16x16xf32>
    %55 = arith.truncf %53 : vector<8x16xf32> to vector<8x16xbf16>
    %cst_37 = arith.constant dense<0.000000e+00> : vector<16x16xf32>
    %56 = tpu.matmul %0, %55, %cst_37 {dimension_numbers = #tpu.dot_dimension_numbers<[1], [0], [0], [1], [0, 0, 1, 1], [], []>} : vector<16x8xbf16>, vector<8x16xbf16>, vector<16x16xf32> -> vector<16x16xf32>
    %57 = arith.addf %56, %54 : vector<16x16xf32>
    %cst_38 = arith.constant 0.000000e+00 : f32
    %58 = vector.broadcast %cst_38 : f32 to vector<16x16xf32>
    %59 = arith.maximumf %57, %58 : vector<16x16xf32>
    %60 = arith.truncf %59 : vector<16x16xf32> to vector<16x16xbf16>
    %cst_39 = arith.constant dense<0.000000e+00> : vector<8x16xf32>
    %61 = tpu.matmul %1, %60, %cst_39 {dimension_numbers = #tpu.dot_dimension_numbers<[1], [0], [0], [1], [0, 0, 1, 1], [], []>} : vector<8x16xbf16>, vector<16x16xbf16>, vector<8x16xf32> -> vector<8x16xf32>
    %62 = arith.truncf %61 : vector<8x16xf32> to vector<8x16xbf16>
    %c0_40 = arith.constant 0 : index
    %c0_41 = arith.constant 0 : index
    %63 = vector.load %arg12[%c0_40, %c0_41] : memref<16x8xbf16, #tpu.memory_space<vmem>>, vector<16x8xbf16>
    %cst_42 = arith.constant dense<0.000000e+00> : vector<8x8xf32>
    %64 = tpu.matmul %62, %63, %cst_42 {dimension_numbers = #tpu.dot_dimension_numbers<[1], [0], [0], [1], [0, 0, 1, 1], [], []>} : vector<8x16xbf16>, vector<16x8xbf16>, vector<8x8xf32> -> vector<8x8xf32>
    %c0_43 = arith.constant 0 : index
    %c0_44 = arith.constant 0 : index
    %65 = vector.load %arg13[%c0_43, %c0_44] : memref<16x8xbf16, #tpu.memory_space<vmem>>, vector<16x8xbf16>
    %cst_45 = arith.constant dense<0.000000e+00> : vector<8x8xf32>
    %66 = tpu.matmul %55, %65, %cst_45 {dimension_numbers = #tpu.dot_dimension_numbers<[1], [0], [0], [1], [0, 0, 1, 1], [], []>} : vector<8x16xbf16>, vector<16x8xbf16>, vector<8x8xf32> -> vector<8x8xf32>
    %67 = arith.addf %64, %66 : vector<8x8xf32>
    %c0_46 = arith.constant 0 : index
    %c0_47 = arith.constant 0 : index
    %68 = vector.load %arg14[%c0_46, %c0_47] : memref<1x8xf32, #tpu.memory_space<vmem>>, vector<1x8xf32>
    %69 = vector.broadcast %68 : vector<1x8xf32> to vector<8x8xf32>
    %70 = arith.addf %67, %69 : vector<8x8xf32>
    %cst_48 = arith.constant 0.000000e+00 : f32
    %71 = vector.broadcast %cst_48 : f32 to vector<8x8xf32>
    %72 = arith.cmpf ogt, %70, %71 : vector<8x8xf32>
    %cst_49 = arith.constant 2.000000e-01 : f32
    %73 = vector.broadcast %cst_49 : f32 to vector<8x8xf32>
    %74 = arith.mulf %73, %70 : vector<8x8xf32>
    %75 = arith.select %72, %70, %74 : vector<8x8xi1>, vector<8x8xf32>
    %cst_50 = arith.constant 0.000000e+00 : f32
    %76 = vector.broadcast %cst_50 : f32 to vector<8x8xf32>
    %77 = arith.maximumf %75, %76 : vector<8x8xf32>
    %c0_51 = arith.constant 0 : index
    %c0_52 = arith.constant 0 : index
    %78 = vector.load %arg15[%c0_51, %c0_52] : memref<8x8xf32, #tpu.memory_space<vmem>>, vector<8x8xf32>
    tpu.vector_store %arg15[%c0_51, %c0_52], %77 {strides = array<i32>} : memref<8x8xf32, #tpu.memory_space<vmem>>, vector<8x8xf32>,
    return
  }
}

</mosaic_0001>

<bundles_post_ra>
// kernel: tpu_custom_call.1
= control target key start
LH: loop header
LB: loop body
LE: loop exit
PB: predicated region body
PF: predicated region fallthrough
CT: control target
= control target key end

     0   :  { %vm70_vm0 = vcmask 1042432   ;;  %v915_v2 = vmov 0.0   ;;  %vm126_vm1 = vcmask 1043456   ;;  %vm916_vm2 = vmmov 0   ;;  %s1127_s0 = inlined_call_operand.vmem [shape: bf16[16,8], index: 0, kind: input, shape index: {}]   ;;  %s1128_s1 = inlined_call_operand.vmem [shape: bf16[8,16], index: 1, kind: input, shape index: {}]   ;;  %s1129_s2 = inlined_call_operand.vmem [shape: f32[8,8], index: 2, kind: input, shape index: {}]   ;;  %s1130_s3 = inlined_call_operand.vmem [shape: f32[16,6], index: 3, kind: input, shape index: {}]   ;;  %s1131_s4 = inlined_call_operand.vmem [shape: bf16[6,40], index: 4, kind: input, shape index: {}]   ;;  %s1132_s5 = inlined_call_operand.vmem [shape: f32[1,40], index: 5, kind: input, shape index: {}]   ;;  %s1133_s6 = inlined_call_operand.vmem [shape: bf16[8,16], index: 6, kind: input, shape index: {}]   ;;  %s1134_s7 = inlined_call_operand.vmem [shape: bf16[8,16], index: 7, kind: input, shape index: {}]   ;;  %s1135_s8 = inlined_call_operand.vmem [shape: f32[1,16], index: 8, kind: input, shape index: {}]   ;;  %s1136_s9 = inlined_call_operand.vmem [shape: bf16[16,16], index: 9, kind: input, shape index: {}]   ;;  %s1137_s10 = inlined_call_operand.vmem [shape: bf16[16,16], index: 10, kind: input, shape index: {}]   ;;  %s1138_s11 = inlined_call_operand.vmem [shape: f32[1,16], index: 11, kind: input, shape index: {}]   ;;  %s1139_s12 = inlined_call_operand.vmem [shape: bf16[16,8], index: 12, kind: input, shape index: {}]   ;;  %s1140_s13 = inlined_call_operand.vmem [shape: bf16[16,8], index: 13, kind: input, shape index: {}]   ;;  %s1141_s14 = inlined_call_operand.vmem [shape: f32[1,8], index: 14, kind: input, shape index: {}]   ;;  %s1142_s15 = inlined_call_operand.hbm [shape: f32[8,8], index: 15, kind: output, shape index: {}]  }
   0x1   :  { %v58_v0 = vld [vmem:[%s1131_s4] sm:$0x7]  ;;  %803 = vmatprep.subr.bf16.mxu0 %v915_v2  ;;  %809 = vmatprep.subr.bf16.mxu1 %v915_v2  ;;  %v56_v6 = vld [vmem:[%s1130_s3 + $0x8] sm:$0xff]  ;;  %vm66_vm3 = vcmask 48128   ;;  %vm122_vm4 = vcmask 64512  }
   0x2   :  { %v115_v1 = vld [vmem:[%s1129_s2] sm:$0xff]  ;;  %v72_v3 = vsel %vm70_vm0, %v58_v0, 0  ;;  %805 = vmatprep.mubr.msk.bf16.mxu0 %vm916_vm2, %v915_v2  ;;  %811 = vmatprep.mubr.msk.bf16.mxu1 %vm916_vm2, %v915_v2 }
   0x3   :  { %v116_v4 = vpack.c.bf16 %v115_v1, %v115_v1  ;;  %v55_v5 = vld [vmem:[%s1130_s3] sm:$0xff]  ;;  %804 = vmatpush3.bf16.msra.mxu0 %v72_v3 }
   0x4   :  { %v57_v7 = vpack.c.bf16 %v56_v6, %v55_v5  ;;  %v1022_v9 = vld [vmem:[%s1127_s0] sm:$0xff]   ;;  %815 = vmatprep.subr.bf16.mxu0 %v915_v2 }
   0x5   :  { %v128_v8 = vsel %vm126_vm1, %v116_v4, 0 }
   0x6   :  { %810 = vmatpush3.bf16.msra.mxu1 %v128_v8  ;;  %806 = vmatmul.mubr.msk.bf16.vlgmr.msra.gmra.mrb[0].mxu0 %vm66_vm3, %v57_v7 }
   0x7   :  { %821 = vmatprep.subr.bf16.mxu1 %v915_v2  ;;  %817 = vmatprep.mubr.msk.bf16.mxu0 %vm916_vm2, %v915_v2 }
   0x8   :  { %20 = vsyncpa [#allocation3], 0  ;;  %v220_v10 = vld [vmem:[%s1134_s7] sm:$0xf]  ;;  %s917_s7 = smov 104   ;;  %s918_s28 = smov 120  }
   0x9   :  { %812 = vmatmul.mubr.msk.bf16.vlgmr.msra.gmra.mrb[0].mxu1 %vm122_vm4, %v1022_v9  ;;  %v224_v11 = vsel %vm126_vm1, %v220_v10, 0  ;;  %v755_v12 = vld [vmem:[%s1132_s5] ss:$0 sm:$0xff]  ;;  %vm174_vm5 = vcmask 130048  }
   0xa   :  { %823 = vmatprep.mubr.msk.bf16.mxu1 %vm916_vm2, %v915_v2  ;;  %822 = vmatpush3.bf16.msra.mxu1 %v224_v11  ;;  %v1046_v28 = vld [vmem:[%s1128_s1] sm:$0xf] }
   0xb   :  { %833 = vmatprep.subr.bf16.mxu1 %v915_v2  ;;  %v219_v29 = vld [vmem:[%s1133_s6] sm:$0xf] }
   0xc   :  { %v270_v30 = vsel %vm126_vm1, %v219_v29, 0  ;;  %v762_v41 = vld [vmem:[%s1135_s8] ss:$0 sm:$0xff] }
   0xd   :  { %v887_v51 = vld [vmem:[%s1137_s10] sm:$0xff]  }
  0x11   :  { %824 = vmatmul.mubr.msk.bf16.vlgmr.msra.gmra.mrb[4].mxu1 %vm122_vm4, %v116_v4  ;;  %v888_v4 = vld [vmem:[%s1136_s9] sm:$0xff]  }
  0x12   :  { %835 = vmatprep.mubr.msk.bf16.mxu1 %vm916_vm2, %v915_v2 }
  0xd9   :  { %v108_v13 = vpop.f32.mrb[0].mxu0 }
  0xda   :  { %v109_v14 = vadd.f32 %v755_v12, %v108_v13  ;;  %v807_v15 = vpop.f32.mrb[1].mxu0 }
  0xdb   :  { %v111_v16 = vpop.f32.mrb[2].mxu0 }
  0xdc   :  { %v164_v17 = vpop.f32.mrb[0].mxu1  ;;  %v112_v18 = vadd.f32 %v755_v12, %v111_v16  ;;  %533 = vrot.lane.b32.xlu1 %v109_v14, %s917_s7  ;;  %326 = vrot.lane.b32.xlu0 %v109_v14, %s918_s28  ;;  %v808_v20 = vpop.f32.mrb[3].mxu0  ;;  %v769_v12 = vld [vmem:[%s1138_s11] ss:$0 sm:$0xff] }
  0xdd   :  { %v165_v19 = vadd.f32 %v164_v17, %v109_v14  ;;  %v813_v21 = vpop.f32.mrb[1].mxu1 }
  0xde   :  { %v167_v22 = vpop.f32.mrb[2].mxu1 }
  0xdf   :  { %v168_v23 = vadd.f32 %v167_v22, %v112_v18  ;;  %v814_v24 = vpop.f32.mrb[3].mxu1  ;;  %v171_v25 = vmax.f32 %v165_v19, 0.0  ;;  %v889_v22 = vld [vmem:[%s1140_s13] sm:$0xff]  }
  0xe0   :  { %535 = vrot.lane.b32.xlu1 %v112_v18, %s917_s7  ;;  %328 = vrot.lane.b32.xlu0 %v112_v18, %s918_s28 }
  0xe1   :  { %v172_v26 = vmax.f32 %v168_v23, 0.0 }
  0xe3   :  { %v173_v27 = vpack.c.bf16 %v172_v26, %v171_v25 }
  0xe4   :  { %v260_v31 = vpop.f32.mrb[4].mxu1 }
  0xe5   :  { %816 = vmatpush3.bf16.msra.mxu0 %v173_v27  ;;  %v825_v32 = vpop.f32.mrb[5].mxu1 }
  0xe6   :  { %827 = vmatprep.subr.bf16.mxu0 %v915_v2  ;;  %v263_v33 = vpop.f32.mrb[6].mxu1 }
  0xe7   :  { %v826_v34 = vpop.f32.mrb[7].mxu1 }
  0xe8   :  { %818 = vmatmul.mubr.msk.bf16.vlgmr.msra.gmra.mrb[4].mxu0 %vm174_vm5, %v1046_v28 }
  0xe9   :  { %829 = vmatprep.mubr.msk.bf16.mxu0 %vm916_vm2, %v915_v2  ;;  %828 = vmatpush3.bf16.msra.mxu0 %v270_v30 }
  0xea   :  { %839 = vmatprep.subr.bf16.mxu0 %v915_v2 }
 0x14e   :  { %v327_v52 = vpop.permute.xlu0 %326  ;;  %v534_v23 = vpop.permute.xlu1 %533 }
 0x152   :  { %v329_v56 = vpop.permute.xlu0 %328  ;;  %v536_v27 = vpop.permute.xlu1 %535 }
 0x1bb   :  { %v212_v35 = vpop.f32.mrb[4].mxu0 }
 0x1bc   :  { %v218_v36 = vpack.c.bf16 %v212_v35, %v212_v35  ;;  %v819_v37 = vpop.f32.mrb[5].mxu0 }
 0x1bd   :  { %v215_v38 = vpop.f32.mrb[6].mxu0 }
 0x1be   :  { %v820_v39 = vpop.f32.mrb[7].mxu0  ;;  %830 = vmatmul.mubr.msk.bf16.vlgmr.msra.gmra.mrb[8].mxu0 %vm122_vm4, %v218_v36  ;;  %v890_v38 = vld [vmem:[%s1139_s12] sm:$0xff]   ;;  %s919_s12 = smov [#allocation2]  }
 0x1bf   :  { %841 = vmatprep.mubr.msk.bf16.mxu0 %vm916_vm2, %v915_v2  ;;  %s747_s24 = sshll.u32 %s919_s12, 4  ;;  %s748_s24 = int_to_ptr.vmem [resolvable:$true] %s747_s24 }
 0x1c0   :  { %s891_s25 = scalar_lea.vmem %s748_s24, 128  ;;  %p896_p1 = scmp.lt.s32.totalorder %s748_s24, %s748_s24 }
 0x1c1   :  { %p892_p0 = scmp.ne.s32.totalorder %s748_s24, %s891_s25  ;;  %p897_p2 = scmp.lt.s32.totalorder %s891_s25, %s891_s25 }
 0x1c3   :  { %p898_p3 = por %p897_p2, %p896_p1 }
 0x1c5   :  { %p899_p4 = pnand %p898_p3, %p892_p0 }
 0x291   :  { %v306_v40 = vpop.f32.mrb[8].mxu0 }
 0x292   :  { %v307_v42 = vadd.f32 %v306_v40, %v260_v31  ;;  %v831_v43 = vpop.f32.mrb[9].mxu0 }
 0x293   :  { %v309_v44 = vpop.f32.mrb[10].mxu0 }
 0x294   :  { %v319_v45 = vadd.f32 %v762_v41, %v307_v42  ;;  %v832_v46 = vpop.f32.mrb[11].mxu0 }
 0x296   :  { %vm320_vm6 = vcmp.gt.f32.partialorder %v319_v45, 0.0  ;;  %v321_v47 = vmul.f32 0.2, %v319_v45 }
 0x298   :  { %v322_v48 = vsel %vm320_vm6, %v319_v45, %v321_v47 }
 0x299   :  { %v323_v49 = vpack.c.bf16 %v322_v48, %v322_v48 }
 0x29b   :  { %v333_v50 = vsel %vm126_vm1, %v323_v49, 0 }
 0x29c   :  { %834 = vmatpush3.bf16.msra.mxu1 %v333_v50 }
 0x29d   :  { %845 = vmatprep.subr.bf16.mxu1 %v915_v2 }
 0x29f   :  { %836 = vmatmul.mubr.msk.bf16.vlgmr.msra.gmra.mrb[8].mxu1 %vm122_vm4, %v1022_v9 }
 0x2a0   :  { %846 = vmatpush3.bf16.msra.mxu1 %v887_v51  ;;  %847 = vmatprep.mubr.msk.bf16.mxu1 %vm916_vm2, %v915_v2 }
 0x2a1   :  { %857 = vmatprep.subr.bf16.mxu1 %v915_v2 }
 0x2a7   :  { %848 = vmatmul.mubr.msk.bf16.vlgmr.msra.gmra.mrb[12].mxu1 %vm174_vm5, %v323_v49 }
 0x2a8   :  { %859 = vmatprep.mubr.msk.bf16.mxu1 %vm916_vm2, %v915_v2 }
 0x372   :  { %v369_v53 = vpop.f32.mrb[8].mxu1 }
 0x373   :  { %v370_v54 = vadd.f32 %v369_v53, %v327_v52  ;;  %v837_v55 = vpop.f32.mrb[9].mxu1 }
 0x374   :  { %v372_v57 = vpop.f32.mrb[10].mxu1 }
 0x375   :  { %v373_v58 = vadd.f32 %v372_v57, %v329_v56  ;;  %v838_v59 = vpop.f32.mrb[11].mxu1  ;;  %v376_v60 = vmax.f32 %v370_v54, 0.0 }
 0x377   :  { %v377_v61 = vmax.f32 %v373_v58, 0.0 }
 0x379   :  { %v378_v62 = vpack.c.bf16 %v377_v61, %v376_v60 }
 0x37a   :  { %v466_v63 = vpop.f32.mrb[12].mxu1 }
 0x37b   :  { %840 = vmatpush3.bf16.msra.mxu0 %v378_v62  ;;  %v849_v0 = vpop.f32.mrb[13].mxu1 }
 0x37c   :  { %v469_v1 = vpop.f32.mrb[14].mxu1  ;;  %851 = vmatprep.subr.bf16.mxu0 %v915_v2 }
 0x37d   :  { %v850_v3 = vpop.f32.mrb[15].mxu1 }
 0x37e   :  { %842 = vmatmul.mubr.msk.bf16.vlgmr.msra.gmra.mrb[12].mxu0 %vm174_vm5, %v1046_v28 }
 0x37f   :  { %853 = vmatprep.mubr.msk.bf16.mxu0 %vm916_vm2, %v915_v2  ;;  %852 = vmatpush3.bf16.msra.mxu0 %v888_v4 }
 0x380   :  { %863 = vmatprep.subr.bf16.mxu0 %v915_v2 }
 0x451   :  { %v413_v5 = vpop.f32.mrb[12].mxu0 }
 0x452   :  { %v419_v6 = vpack.c.bf16 %v413_v5, %v413_v5  ;;  %v843_v7 = vpop.f32.mrb[13].mxu0 }
 0x453   :  { %v416_v8 = vpop.f32.mrb[14].mxu0 }
 0x454   :  { %v844_v10 = vpop.f32.mrb[15].mxu0  ;;  %854 = vmatmul.mubr.msk.bf16.vlgmr.msra.gmra.mrb[16].mxu0 %vm174_vm5, %v419_v6 }
 0x455   :  { %865 = vmatprep.mubr.msk.bf16.mxu0 %vm916_vm2, %v915_v2 }
 0x527   :  { %v515_v11 = vpop.f32.mrb[16].mxu0 }
 0x528   :  { %v516_v13 = vadd.f32 %v515_v11, %v466_v63  ;;  %v855_v14 = vpop.f32.mrb[17].mxu0 }
 0x529   :  { %v518_v15 = vpop.f32.mrb[18].mxu0 }
 0x52a   :  { %v528_v16 = vadd.f32 %v769_v12, %v516_v13  ;;  %v856_v17 = vpop.f32.mrb[19].mxu0 }
 0x52c   :  { %vm529_vm7 = vcmp.gt.f32.partialorder %v528_v16, 0.0  ;;  %v530_v18 = vmul.f32 0.2, %v528_v16 }
 0x52e   :  { %v531_v19 = vsel %vm529_vm7, %v528_v16, %v530_v18 }
 0x52f   :  { %v532_v20 = vpack.c.bf16 %v531_v19, %v531_v19 }
 0x531   :  { %v540_v21 = vsel %vm126_vm1, %v532_v20, 0 }
 0x532   :  { %858 = vmatpush3.bf16.msra.mxu1 %v540_v21 }
 0x533   :  { %869 = vmatprep.subr.bf16.mxu1 %v915_v2 }
 0x535   :  { %860 = vmatmul.mubr.msk.bf16.vlgmr.msra.gmra.mrb[16].mxu1 %vm122_vm4, %v1022_v9 }
 0x536   :  { %870 = vmatpush3.bf16.msra.mxu1 %v889_v22  ;;  %871 = vmatprep.mubr.msk.bf16.mxu1 %vm916_vm2, %v915_v2 }
 0x53d   :  { %872 = vmatmul.mubr.msk.bf16.vlgmr.msra.gmra.mrb[20].mxu1 %vm174_vm5, %v532_v20 }
 0x608   :  { %v576_v24 = vpop.f32.mrb[16].mxu1 }
 0x609   :  { %v577_v25 = vadd.f32 %v576_v24, %v534_v23  ;;  %v861_v26 = vpop.f32.mrb[17].mxu1 }
 0x60a   :  { %v579_v29 = vpop.f32.mrb[18].mxu1 }
 0x60b   :  { %v580_v30 = vadd.f32 %v579_v29, %v536_v27  ;;  %v862_v31 = vpop.f32.mrb[19].mxu1  ;;  %v583_v32 = vmax.f32 %v577_v25, 0.0 }
 0x60d   :  { %v584_v33 = vmax.f32 %v580_v30, 0.0 }
 0x60f   :  { %v585_v34 = vpack.c.bf16 %v584_v33, %v583_v32 }
 0x610   :  { %v673_v35 = vpop.f32.mrb[20].mxu1 }
 0x611   :  { %864 = vmatpush3.bf16.msra.mxu0 %v585_v34  ;;  %v873_v9 = vpop.f32.mrb[21].mxu1 }
 0x612   :  { %v676_v36 = vpop.f32.mrb[22].mxu1  ;;  %875 = vmatprep.subr.bf16.mxu0 %v915_v2 }
 0x613   :  { %v874_v37 = vpop.f32.mrb[23].mxu1 }
 0x614   :  { %866 = vmatmul.mubr.msk.bf16.vlgmr.msra.gmra.mrb[20].mxu0 %vm174_vm5, %v1046_v28  ;;  %v776_v28 = vld [vmem:[%s1141_s14] ss:$0 sm:$0xff] }
 0x615   :  { %877 = vmatprep.mubr.msk.bf16.mxu0 %vm916_vm2, %v915_v2  ;;  %876 = vmatpush3.bf16.msra.mxu0 %v890_v38 }
 0x6e7   :  { %v620_v39 = vpop.f32.mrb[20].mxu0 }
 0x6e8   :  { %v626_v40 = vpack.c.bf16 %v620_v39, %v620_v39  ;;  %v867_v41 = vpop.f32.mrb[21].mxu0 }
 0x6e9   :  { %v623_v42 = vpop.f32.mrb[22].mxu0 }
 0x6ea   :  { %878 = vmatmul.mubr.msk.bf16.vlgmr.msra.gmra.mrb[24].mxu0 %vm174_vm5, %v626_v40  ;;  %v868_v43 = vpop.f32.mrb[23].mxu0 }
 0x7bd   :  { %v722_v44 = vpop.f32.mrb[24].mxu0 }
 0x7be   :  { %v723_v45 = vadd.f32 %v722_v44, %v673_v35  ;;  %v879_v46 = vpop.f32.mrb[25].mxu0 }
 0x7bf   :  { %v725_v2 = vpop.f32.mrb[26].mxu0 }
 0x7c0   :  { %v735_v47 = vadd.f32 %v776_v28, %v723_v45  ;;  %v880_v48 = vpop.f32.mrb[27].mxu0 }
 0x7c2   :  { %v737_v49 = vmul.f32 0.2, %v735_v47  ;;  %vm736_vm8 = vcmp.gt.f32.partialorder %v735_v47, 0.0 }
 0x7c4   :  { %v738_v50 = vsel %vm736_vm8, %v735_v47, %v737_v49 }
 0x7c5   :  { %v739_v51 = vmax.f32 %v738_v50, 0.0 }
 0x7c7   :  { %740 = vst.msk [vmem:[#allocation2] sm:$0xff] %vm122_vm4, %v739_v51 }
 0x7c8   :  { %902 = shalt.err (!%p899_p4)
}
 0x7c9   :  { %s903_s4 = scalar_lea.hbm %s1142_s15, 128 }
 0x7ca   :  { %p904_p5 = scmp.ne.s32.totalorder %s1142_s15, %s903_s4  ;;  %p907_p6 = scmp.lt.u32.totalorder %s903_s4, %s1142_s15 }
 0x7cc   :  { %p909_p7 = pnand %p907_p6, %p904_p5 }
 0x7ce   :  { %912 = shalt.err (!%p909_p7)
}
 0x7cf   :  { %750 = dma.vmem_to_hbm [thread:$0]  %s748_s24, 128, %s1142_s15, [#allocation3]  }
 0x7d0   :  { %913 = dma.done.wait [#allocation3], 128  }
 0x7d1   :  { %914 = vsyncadd [#allocation3], 4294967168 }
 0x7d2   :  { %754 = vsyncpa [#allocation3], 1 }

</bundles_post_ra>
